<compile_context>
chip_gen: v5e
topology: v5e:2x2
jax: 0.10.0
libtpu: 0.0.40
codegen_flags: <defaults>
</compile_context>

<pallas_src>
import functools

import jax
import jax.numpy as jnp
from jax.experimental import pallas as pl
from jax.experimental.pallas import tpu as pltpu


def _round_up(x, m):
    return (x + m - 1) // m * m


def _sublane_multiple(*dtypes):
    # Sublane pack: 8 for 4-byte dtypes, 16 for bf16/f16, 32 for int8/fp8.
    itemsize = min(jnp.dtype(d).itemsize for d in dtypes)
    return max(8, 32 // max(int(itemsize), 1))


def _num_tensorcores():
    # v7x (and megacore parts) expose 2 TensorCores per chip; v5e/v6e have 1.
    try:
        info = pltpu.get_tpu_info()
        for name in ("num_cores", "core_count", "num_tensorcores", "tensor_cores"):
            v = getattr(info, name, None)
            if v:
                return int(v)
    except Exception:
        pass
    try:
        d = jax.devices()[0]
        v = getattr(d, "num_cores", None)
        if v:
            return int(v)
        if "v7" in str(getattr(d, "device_kind", "")).lower():
            return 2
    except Exception:
        pass
    return 1


def _vmem_limit_bytes():
    # Physical VMEM per TensorCore minus headroom; cap at ~100 MiB on 128 MiB parts,
    # ~48 MiB on v7x (64 MiB physical).
    try:
        cap = int(pltpu.get_tpu_info().vmem_capacity_bytes)
    except Exception:
        cap = 64 << 20                       # conservative (v7x-sized) fallback
    limit = min(cap - (16 << 20), 100 << 20)
    return max(limit, 32 << 20)


def _criterion_kernel(pred_ref, label_ref, pa_ref, la_ref, out_ref,
                      ce_acc, mse_acc, *, tile_n, tile_a, n_rows, attn_rows):
    p = pl.program_id(0)
    i = pl.program_id(1)
    k = pl.num_programs(1)
    step = p * k + i                        # UNclamped linear step (index_maps clamp; we mask)

    @pl.when(i == 0)
    def _():
        ce_acc[...] = jnp.zeros_like(ce_acc)
        mse_acc[...] = jnp.zeros_like(mse_acc)

    # ---- cross-entropy partial: per-row (lse - target_logit), accumulated as a column ----
    logits = pred_ref[...].astype(jnp.float32)      # (tile_n, C): f32 needed for the lse
    labels = label_ref[...]                         # native dtype: only max/compared (argmax)
    tn, c = logits.shape

    row_ids = step * tile_n + jax.lax.broadcasted_iota(jnp.int32, (tn, 1), 0)
    valid = row_ids < n_rows                        # masks tail + over-provisioned tiles

    # integer targets = argmax(label, -1) with first-index tie-break (matches torch)
    # TODO(synk): NaN rows in `label` give target_logit = 0 instead of propagating NaN.
    col = jax.lax.broadcasted_iota(jnp.int32, (tn, c), 1)
    row_max = jnp.max(labels, axis=-1, keepdims=True)
    idx = jnp.min(jnp.where(labels == row_max, col, c), axis=-1, keepdims=True)   # (tn, 1)
    target_logit = jnp.sum(jnp.where(col == idx, logits, 0.0),
                           axis=-1, keepdims=True)                                # (tn, 1)

    m = jnp.max(logits, axis=-1, keepdims=True)
    lse = jnp.log(jnp.sum(jnp.exp(logits - m), axis=-1, keepdims=True)) + m       # (tn, 1)
    ce_acc[...] += jnp.where(valid, lse - target_logit, 0.0)

    # ---- MSE partial: lane-reduce first, then mask only the (tile_a, 1) column ----
    diff = pa_ref[...].astype(jnp.float32) - la_ref[...].astype(jnp.float32)      # (tile_a, L)
    sq_rowsum = jnp.sum(diff * diff, axis=-1, keepdims=True)                      # (tile_a, 1)
    a_ids = step * tile_a + jax.lax.broadcasted_iota(jnp.int32, (tile_a, 1), 0)
    mse_acc[...] += jnp.where(a_ids < attn_rows, sq_rowsum, 0.0)

    # Reduce to scalars and store ONCE per parallel chunk (no per-step SMEM RMW / stores).
    @pl.when(i == k - 1)
    def _():
        out_ref[0, 0] = jnp.sum(ce_acc[...])
        out_ref[0, 1] = jnp.sum(mse_acc[...])


def my_criterion(pred, pred_attention, label, label_attention):
    if pred.shape != label.shape:
        raise ValueError("pred and label must have the same shape")
    if pred_attention.shape != label_attention.shape:
        raise ValueError("pred_attention and label_attention must have the same shape")

    C = pred.shape[-1]
    pred2 = pred.reshape(-1, C)                  # native dtype; f32 cast happens in-VMEM
    label2 = label.reshape(-1, C)
    n_rows = pred2.shape[0]

    # ---- lane-dense attention slab (the natural (N, A) view wastes lanes when A << 128) ----
    attn_elems = int(pred_attention.size)
    pa_flat = pred_attention.reshape(-1)
    la_flat = label_attention.reshape(-1)
    lane = next((cand for cand in (1024, 512, 256, 128) if attn_elems % cand == 0), 0)
    if lane == 0:
        # rare fallback: zero-pad the tail so both tensors pad identically -> diff == 0, exact.
        lane = 128
        padded = _round_up(attn_elems, lane)
        pa_flat = jnp.pad(pa_flat, (0, padded - attn_elems))
        la_flat = jnp.pad(la_flat, (0, padded - attn_elems))
    pa2 = pa_flat.reshape(-1, lane)
    la2 = la_flat.reshape(-1, lane)
    attn_rows = pa2.shape[0]

    # ---- VMEM-budget-driven row tile, rounded to the dtype sublane multiple ----
    bp, bl = jnp.dtype(pred2.dtype).itemsize, jnp.dtype(label2.dtype).itemsize
    bpa, bla = jnp.dtype(pa2.dtype).itemsize, jnp.dtype(la2.dtype).itemsize
    sub_pl = _sublane_multiple(pred2.dtype, label2.dtype)
    sub_a = _sublane_multiple(pa2.dtype, la2.dtype)

    vmem_limit = _vmem_limit_bytes()
    budget = int(vmem_limit * 0.7)               # headroom for accumulators / compiler temps
    c_pad = _round_up(C, 128)
    ratio = attn_rows / max(n_rows, 1)           # attention slab rows streamed per pred row
    bytes_per_row = (2.0 * c_pad * (bp + bl)                 # 2x double-buffered pred + label
                     + 2.0 * ratio * lane * (bpa + bla)      # 2x double-buffered attention slab
                     + 4.0 * 128 * (1.0 + ratio))            # (tile, 1) f32 accumulators
    tile_n = int(budget // bytes_per_row)
    tile_n = max(sub_pl, (tile_n // sub_pl) * sub_pl)
    tile_n = min(tile_n, 2048)                   # >=256-row streaming tiles already ~85% of HBM roofline
    if tile_n >= n_rows:
        tile_n = n_rows                          # single full block (full-dim block is always legal)

    total_blocks = pl.cdiv(n_rows, tile_n)
    n_par = 2 if (_num_tensorcores() >= 2 and total_blocks >= 2) else 1
    k = pl.cdiv(total_blocks, n_par)
    n_steps = n_par * k

    tile_a = _round_up(pl.cdiv(attn_rows, n_steps), sub_a)
    if tile_a >= attn_rows:
        tile_a = attn_rows
    last_blk = total_blocks - 1
    last_a_blk = pl.cdiv(attn_rows, tile_a) - 1

    def pred_map(p, i):
        # Clamp so over-provisioned (p, i) tiles stay in bounds; they are masked in-kernel.
        return (jnp.minimum(p * k + i, last_blk), 0)

    def attn_map(p, i):
        return (jnp.minimum(p * k + i, last_a_blk), 0)

    kernel = functools.partial(_criterion_kernel, tile_n=tile_n, tile_a=tile_a,
                               n_rows=n_rows, attn_rows=attn_rows)

    partials = pl.pallas_call(
        kernel,
        out_shape=jax.ShapeDtypeStruct((n_par, 2), jnp.float32),
        grid_spec=pltpu.PrefetchScalarGridSpec(
            num_scalar_prefetch=0,
            grid=(n_par, k),
            in_specs=[
                pl.BlockSpec((tile_n, C), pred_map),
                pl.BlockSpec((tile_n, C), pred_map),
                pl.BlockSpec((tile_a, lane), attn_map),
                pl.BlockSpec((tile_a, lane), attn_map),
            ],
            out_specs=pl.BlockSpec((1, 2), lambda p, i: (p, 0),
                                   memory_space=pltpu.MemorySpace.SMEM),
            scratch_shapes=[pltpu.VMEM((tile_n, 1), jnp.float32),
                            pltpu.VMEM((tile_a, 1), jnp.float32)],
        ),
        compiler_params=pltpu.CompilerParams(
            dimension_semantics=("parallel", "arbitrary"),
            vmem_limit_bytes=int(vmem_limit)),
    )(pred2, label2, pa2, la2)

    # Single final normalization / combine of the raw per-chunk sums.
    ce = jnp.sum(partials[:, 0]) / jnp.float32(n_rows)
    mse = jnp.sum(partials[:, 1]) / jnp.float32(attn_elems)
    return ce + mse


if __name__ == "__main__":
    key = jax.random.PRNGKey(0)
    k1, k2, k3, k4 = jax.random.split(key, 4)

    B, T, C = 2, 8, 32      # batch, sequence, num_classes
    pred = jax.random.normal(k1, (B, T, C), jnp.float32)
    label = jax.random.normal(k2, (B, T, C), jnp.float32)          # argmax(-1) -> class ids
    pred_attention = jax.random.normal(k3, (B, T, T), jnp.float32)
    label_attention = jax.random.normal(k4, (B, T, T), jnp.float32)

    loss = my_criterion(pred, pred_attention, label, label_attention)
    jax.block_until_ready(loss)

    # pure-JAX reference (same semantics as the PyTorch module)
    logits = pred.reshape(-1, C)
    tgt = jnp.argmax(label.reshape(-1, C), axis=-1)
    logp = jax.nn.log_softmax(logits, axis=-1)
    ce_ref = -jnp.mean(jnp.take_along_axis(logp, tgt[:, None], axis=1))
    mse_ref = jnp.mean((pred_attention - label_attention) ** 2)
    ref = ce_ref + mse_ref
    assert abs(float(loss) - float(ref)) < 1e-4, (float(loss), float(ref))

    print("KERNEL_OK")
</pallas_src>

<mosaic_0001>
module attributes {stable_mosaic.version = 11 : i64} {
  func.func @_criterion_kernel(%arg0: i32, %arg1: i32, %arg2: memref<16x32xf32, #tpu.memory_space<vmem>>, %arg3: memref<16x32xf32, #tpu.memory_space<vmem>>, %arg4: memref<1x128xf32, #tpu.memory_space<vmem>>, %arg5: memref<1x128xf32, #tpu.memory_space<vmem>>, %arg6: memref<1x2xf32, #tpu.memory_space<smem>>, %arg7: memref<16x1xf32, #tpu.memory_space<vmem>>, %arg8: memref<1x1xf32, #tpu.memory_space<vmem>>) attributes {dimension_semantics = [#tpu.dimension_semantics<parallel>, #tpu.dimension_semantics<arbitrary>], iteration_bounds = array<i64: 1, 1>, scalar_prefetch = 0 : i64, scratch_operands = 2 : i64, tpu.core_type = #tpu.core_type<tc>, window_params = [{transform_indices = @transform_0, window_bounds = array<i64: 16, 32>}, {transform_indices = @transform_1, window_bounds = array<i64: 16, 32>}, {transform_indices = @transform_2, window_bounds = array<i64: 1, 128>}, {transform_indices = @transform_3, window_bounds = array<i64: 1, 128>}, {transform_indices = @transform_4, window_bounds = array<i64: 1, 2>}]} {
    %c1_i32 = arith.constant 1 : i32
    %0 = arith.muli %arg0, %c1_i32 : i32
    %1 = arith.addi %0, %arg1 : i32
    %c0_i32 = arith.constant 0 : i32
    %2 = arith.cmpi eq, %arg1, %c0_i32 : i32
    %3 = arith.extui %2 : i1 to i32
    %c0_i32_0 = arith.constant 0 : i32
    %4 = arith.cmpi ne, %3, %c0_i32_0 : i32
    scf.if %4 {
      %cst_29 = arith.constant 0.000000e+00 : f32
      %63 = vector.broadcast %cst_29 : f32 to vector<16x1xf32>
      %c0_30 = arith.constant 0 : index
      %c0_31 = arith.constant 0 : index
      %64 = vector.load %arg7[%c0_30, %c0_31] : memref<16x1xf32, #tpu.memory_space<vmem>>, vector<16x1xf32>
      tpu.vector_store %arg7[%c0_30, %c0_31], %63 {strides = array<i32>} : memref<16x1xf32, #tpu.memory_space<vmem>>, vector<16x1xf32>,
      %cst_32 = arith.constant 0.000000e+00 : f32
      %65 = vector.broadcast %cst_32 : f32 to vector<1x1xf32>
      %c0_33 = arith.constant 0 : index
      %c0_34 = arith.constant 0 : index
      %66 = vector.load %arg8[%c0_33, %c0_34] : memref<1x1xf32, #tpu.memory_space<vmem>>, vector<1x1xf32>
      tpu.vector_store %arg8[%c0_33, %c0_34], %65 {strides = array<i32>} : memref<1x1xf32, #tpu.memory_space<vmem>>, vector<1x1xf32>,
    } else {
    }
    %c0 = arith.constant 0 : index
    %c0_1 = arith.constant 0 : index
    %5 = vector.load %arg2[%c0, %c0_1] : memref<16x32xf32, #tpu.memory_space<vmem>>, vector<16x32xf32>
    %c0_2 = arith.constant 0 : index
    %c0_3 = arith.constant 0 : index
    %6 = vector.load %arg3[%c0_2, %c0_3] : memref<16x32xf32, #tpu.memory_space<vmem>>, vector<16x32xf32>
    %c16_i32 = arith.constant 16 : i32
    %7 = arith.muli %1, %c16_i32 : i32
    %8 = tpu.iota {dimensions = array<i32: 0>} : vector<16x1xi32>
    %9 = vector.broadcast %7 : i32 to vector<16x1xi32>
    %10 = arith.addi %9, %8 : vector<16x1xi32>
    %c16_i32_4 = arith.constant 16 : i32
    %11 = vector.broadcast %c16_i32_4 : i32 to vector<16x1xi32>
    %12 = arith.cmpi slt, %10, %11 : vector<16x1xi32>
    %13 = tpu.iota {dimensions = array<i32: 1>} : vector<16x32xi32>
    %cst = arith.constant dense<0xFF800000> : vector<16xf32>
    %14 = vector.multi_reduction <maximumf>, %6, %cst [1] : vector<16x32xf32> to vector<16xf32>
    %15 = vector.shape_cast %14 : vector<16xf32> to vector<16x1xf32>
    %16 = vector.broadcast %15 : vector<16x1xf32> to vector<16x32xf32>
    %17 = arith.cmpf oeq, %6, %16 : vector<16x32xf32>
    %c32_i32 = arith.constant 32 : i32
    %18 = vector.broadcast %c32_i32 : i32 to vector<16x32xi32>
    %19 = arith.select %17, %13, %18 : vector<16x32xi1>, vector<16x32xi32>
    %cst_5 = arith.constant dense<2147483647> : vector<16xi32>
    %20 = vector.multi_reduction <minsi>, %19, %cst_5 [1] : vector<16x32xi32> to vector<16xi32>
    %21 = vector.shape_cast %20 : vector<16xi32> to vector<16x1xi32>
    %22 = vector.broadcast %21 : vector<16x1xi32> to vector<16x32xi32>
    %23 = arith.cmpi eq, %13, %22 : vector<16x32xi32>
    %cst_6 = arith.constant 0.000000e+00 : f32
    %24 = vector.broadcast %cst_6 : f32 to vector<16x32xf32>
    %25 = arith.select %23, %5, %24 : vector<16x32xi1>, vector<16x32xf32>
    %cst_7 = arith.constant dense<0.000000e+00> : vector<16xf32>
    %26 = vector.multi_reduction <add>, %25, %cst_7 [1] : vector<16x32xf32> to vector<16xf32>
    %27 = vector.shape_cast %26 : vector<16xf32> to vector<16x1xf32>
    %cst_8 = arith.constant dense<0xFF800000> : vector<16xf32>
    %28 = vector.multi_reduction <maximumf>, %5, %cst_8 [1] : vector<16x32xf32> to vector<16xf32>
    %29 = vector.shape_cast %28 : vector<16xf32> to vector<16x1xf32>
    %30 = vector.broadcast %29 : vector<16x1xf32> to vector<16x32xf32>
    %31 = arith.subf %5, %30 : vector<16x32xf32>
    %32 = math.exp %31 : vector<16x32xf32>
    %cst_9 = arith.constant dense<0.000000e+00> : vector<16xf32>
    %33 = vector.multi_reduction <add>, %32, %cst_9 [1] : vector<16x32xf32> to vector<16xf32>
    %34 = vector.shape_cast %33 : vector<16xf32> to vector<16x1xf32>
    %35 = math.log %34 : vector<16x1xf32>
    %36 = arith.addf %35, %29 : vector<16x1xf32>
    %c0_10 = arith.constant 0 : index
    %c0_11 = arith.constant 0 : index
    %37 = vector.load %arg7[%c0_10, %c0_11] : memref<16x1xf32, #tpu.memory_space<vmem>>, vector<16x1xf32>
    %38 = arith.subf %36, %27 : vector<16x1xf32>
    %cst_12 = arith.constant 0.000000e+00 : f32
    %39 = vector.broadcast %cst_12 : f32 to vector<16x1xf32>
    %40 = arith.select %12, %38, %39 : vector<16x1xi1>, vector<16x1xf32>
    %41 = arith.addf %37, %40 : vector<16x1xf32>
    %c0_13 = arith.constant 0 : index
    %c0_14 = arith.constant 0 : index
    %42 = vector.load %arg7[%c0_13, %c0_14] : memref<16x1xf32, #tpu.memory_space<vmem>>, vector<16x1xf32>
    tpu.vector_store %arg7[%c0_13, %c0_14], %41 {strides = array<i32>} : memref<16x1xf32, #tpu.memory_space<vmem>>, vector<16x1xf32>,
    %c0_15 = arith.constant 0 : index
    %c0_16 = arith.constant 0 : index
    %43 = vector.load %arg4[%c0_15, %c0_16] : memref<1x128xf32, #tpu.memory_space<vmem>>, vector<1x128xf32>
    %c0_17 = arith.constant 0 : index
    %c0_18 = arith.constant 0 : index
    %44 = vector.load %arg5[%c0_17, %c0_18] : memref<1x128xf32, #tpu.memory_space<vmem>>, vector<1x128xf32>
    %45 = arith.subf %43, %44 : vector<1x128xf32>
    %46 = arith.mulf %45, %45 : vector<1x128xf32>
    %cst_19 = arith.constant dense<0.000000e+00> : vector<1xf32>
    %47 = vector.multi_reduction <add>, %46, %cst_19 [1] : vector<1x128xf32> to vector<1xf32>
    %48 = vector.shape_cast %47 : vector<1xf32> to vector<1x1xf32>
    %c1_i32_20 = arith.constant 1 : i32
    %49 = arith.muli %1, %c1_i32_20 : i32
    %50 = tpu.iota {dimensions = array<i32: 0>} : vector<1x1xi32>
    %51 = vector.broadcast %49 : i32 to vector<1x1xi32>
    %52 = arith.addi %51, %50 : vector<1x1xi32>
    %c0_21 = arith.constant 0 : index
    %c0_22 = arith.constant 0 : index
    %53 = vector.load %arg8[%c0_21, %c0_22] : memref<1x1xf32, #tpu.memory_space<vmem>>, vector<1x1xf32>
    %c1_i32_23 = arith.constant 1 : i32
    %54 = vector.broadcast %c1_i32_23 : i32 to vector<1x1xi32>
    %55 = arith.cmpi slt, %52, %54 : vector<1x1xi32>
    %cst_24 = arith.constant 0.000000e+00 : f32
    %56 = vector.broadcast %cst_24 : f32 to vector<1x1xf32>
    %57 = arith.select %55, %48, %56 : vector<1x1xi1>, vector<1x1xf32>
    %58 = arith.addf %53, %57 : vector<1x1xf32>
    %c0_25 = arith.constant 0 : index
    %c0_26 = arith.constant 0 : index
    %59 = vector.load %arg8[%c0_25, %c0_26] : memref<1x1xf32, #tpu.memory_space<vmem>>, vector<1x1xf32>
    tpu.vector_store %arg8[%c0_25, %c0_26], %58 {strides = array<i32>} : memref<1x1xf32, #tpu.memory_space<vmem>>, vector<1x1xf32>,
    %c0_i32_27 = arith.constant 0 : i32
    %60 = arith.cmpi eq, %arg1, %c0_i32_27 : i32
    %61 = arith.extui %60 : i1 to i32
    %c0_i32_28 = arith.constant 0 : i32
    %62 = arith.cmpi ne, %61, %c0_i32_28 : i32
    scf.if %62 {
      %c0_29 = arith.constant 0 : index
      %c0_30 = arith.constant 0 : index
      %63 = vector.load %arg7[%c0_29, %c0_30] : memref<16x1xf32, #tpu.memory_space<vmem>>, vector<16x1xf32>
      %64 = vector.shape_cast %63 : vector<16x1xf32> to vector<1x16x1xf32>
      %cst_31 = arith.constant dense<0.000000e+00> : vector<1xf32>
      %65 = vector.multi_reduction <add>, %64, %cst_31 [1, 2] : vector<1x16x1xf32> to vector<1xf32>
      %66 = vector.shape_cast %65 : vector<1xf32> to vector<1x1x1xf32>
      %67 = vector.extract %66[0, 0, 0] : f32 from vector<1x1x1xf32>
      %c0_32 = arith.constant 0 : index
      %c0_33 = arith.constant 0 : index
      %68 = memref.load %arg6[%c0_32, %c0_33] : memref<1x2xf32, #tpu.memory_space<smem>>
      memref.store %67, %arg6[%c0_32, %c0_33] : memref<1x2xf32, #tpu.memory_space<smem>>
      %c0_34 = arith.constant 0 : index
      %c0_35 = arith.constant 0 : index
      %69 = vector.load %arg8[%c0_34, %c0_35] : memref<1x1xf32, #tpu.memory_space<vmem>>, vector<1x1xf32>
      %70 = vector.shape_cast %69 : vector<1x1xf32> to vector<1x1x1xf32>
      %cst_36 = arith.constant dense<0.000000e+00> : vector<1xf32>
      %71 = vector.multi_reduction <add>, %70, %cst_36 [1, 2] : vector<1x1x1xf32> to vector<1xf32>
      %72 = vector.shape_cast %71 : vector<1xf32> to vector<1x1x1xf32>
      %73 = vector.extract %72[0, 0, 0] : f32 from vector<1x1x1xf32>
      %c0_37 = arith.constant 0 : index
      %c1 = arith.constant 1 : index
      %74 = memref.load %arg6[%c0_37, %c1] : memref<1x2xf32, #tpu.memory_space<smem>>
      memref.store %73, %arg6[%c0_37, %c1] : memref<1x2xf32, #tpu.memory_space<smem>>
    } else {
    }
    return
  }
  func.func @transform_0(%arg0: i32, %arg1: i32) -> (i32, i32) {
    %c1_i32 = arith.constant 1 : i32
    %0 = arith.muli %arg0, %c1_i32 : i32
    %1 = arith.addi %0, %arg1 : i32
    %c0_i32 = arith.constant 0 : i32
    %2 = arith.minsi %1, %c0_i32 : i32
    %c0_i32_0 = arith.constant 0 : i32
    %c0_i32_1 = arith.constant 0 : i32
    return %2, %c0_i32_0 : i32, i32
  }
  func.func @transform_1(%arg0: i32, %arg1: i32) -> (i32, i32) {
    %c1_i32 = arith.constant 1 : i32
    %0 = arith.muli %arg0, %c1_i32 : i32
    %1 = arith.addi %0, %arg1 : i32
    %c0_i32 = arith.constant 0 : i32
    %2 = arith.minsi %1, %c0_i32 : i32
    %c0_i32_0 = arith.constant 0 : i32
    %c0_i32_1 = arith.constant 0 : i32
    return %2, %c0_i32_0 : i32, i32
  }
  func.func @transform_2(%arg0: i32, %arg1: i32) -> (i32, i32) {
    %c1_i32 = arith.constant 1 : i32
    %0 = arith.muli %arg0, %c1_i32 : i32
    %1 = arith.addi %0, %arg1 : i32
    %c0_i32 = arith.constant 0 : i32
    %2 = arith.minsi %1, %c0_i32 : i32
    %c0_i32_0 = arith.constant 0 : i32
    %c0_i32_1 = arith.constant 0 : i32
    return %2, %c0_i32_0 : i32, i32
  }
  func.func @transform_3(%arg0: i32, %arg1: i32) -> (i32, i32) {
    %c1_i32 = arith.constant 1 : i32
    %0 = arith.muli %arg0, %c1_i32 : i32
    %1 = arith.addi %0, %arg1 : i32
    %c0_i32 = arith.constant 0 : i32
    %2 = arith.minsi %1, %c0_i32 : i32
    %c0_i32_0 = arith.constant 0 : i32
    %c0_i32_1 = arith.constant 0 : i32
    return %2, %c0_i32_0 : i32, i32
  }
  func.func @transform_4(%arg0: i32, %arg1: i32) -> (i32, i32) {
    %c0_i32 = arith.constant 0 : i32
    %c0_i32_0 = arith.constant 0 : i32
    return %arg0, %c0_i32 : i32, i32
  }
}

</mosaic_0001>

<bundles_post_ra>
// kernel: tpu_custom_call.1
= control target key start
LH: loop header
LB: loop body
LE: loop exit
PB: predicated region body
PF: predicated region fallthrough
CT: control target
= control target key end

     0   :  { %9 = vsyncpa [#allocation5], 0  ;;  %s458_s0 = inlined_call_operand.hbm [shape: f32[16,32], index: 0, kind: input, shape index: {}]   ;;  %s459_s1 = inlined_call_operand.hbm [shape: f32[16,32], index: 1, kind: input, shape index: {}]   ;;  %s460_s2 = inlined_call_operand.vmem [shape: f32[1,128], index: 2, kind: input, shape index: {}]   ;;  %s461_s3 = inlined_call_operand.vmem [shape: f32[1,128], index: 3, kind: input, shape index: {}]   ;;  %s462_s4 = inlined_call_operand.hbm [shape: f32[1,2], index: 4, kind: output, shape index: {}]  }
   0x1   :  { %10 = vsyncpa [#allocation8], 0 }
   0x2   :  { %11 = vsyncpa [#allocation6], 0  ;;  %s22_s17 = sshll.u32 %s458_s0, 4  ;;  %s380_s18 = smov [#allocation4]   ;;  %s23_s17 = int_to_ptr.hbm [resolvable:$true] %s22_s17 }
   0x3   :  { %s24_s19 = sshll.u32 %s380_s18, 4  ;;  %s41_s22 = sshll.u32 %s459_s1, 4  ;;  %s25_s19 = int_to_ptr.vmem [resolvable:$true] %s24_s19  ;;  %s42_s22 = int_to_ptr.hbm [resolvable:$true] %s41_s22 }
   0x4   :  { %s381_s23 = smov 128   ;;  %s382_s24 = smov 8  }
   0x5   :  { %30 = dma.hbm_to_vmem [thread:$0]  %s23_s17, 256, %s25_s19, [#allocation5], %s381_s23, %s381_s23, %s382_s24  }
   0x6   :  { %s383_s25 = smov [#allocation7]  }
   0x7   :  { %s43_s26 = sshll.u32 %s383_s25, 4  ;;  %s44_s26 = int_to_ptr.vmem [resolvable:$true] %s43_s26 }
   0x8   :  { %49 = dma.hbm_to_vmem [thread:$0]  %s42_s22, 256, %s44_s26, [#allocation8], %s381_s23, %s381_s23, %s382_s24  }
   0x9   :  { %374 = dma.done.wait [#allocation5], 256  }
   0xa   :  { %375 = vsyncadd [#allocation5], 4294967040 }
   0xb   :  { %376 = dma.done.wait [#allocation8], 256  }
   0xc   :  { %377 = vsyncadd [#allocation8], 4294967040  ;;  %vm143_vm0 = vcmask 261120   ;;  %v130_v0 = vld [vmem:[#allocation7] sm:$0xff]  ;;  %v417_v1 = vld [vmem:[#allocation4] sm:$0xff]  ;;  %v133_v8 = vlaneseq  ;;  %vm123_vm5 = vcmask 7168  }
   0xd   :  { %v144_v2 = vsel %vm143_vm0, %v130_v0, -inf  ;;  %v194_v3 = vsel %vm143_vm0, %v417_v1, -inf  ;;  %v131_v4 = vld [vmem:[#allocation7 + $0x8] sm:$0xff]  ;;  %v423_v6 = vld [vmem:[#allocation4 + $0x8] sm:$0xff]  ;;  %v384_v38 = vmov 0.0   ;;  %vm233_vm8 = vcmask 1040384  }
   0xe   :  { %145 = vmax.xlane.f32.xlu0 %v144_v2  ;;  %195 = vmax.xlane.f32.xlu2 %v194_v3  ;;  %v147_v5 = vsel %vm143_vm0, %v131_v4, -inf  ;;  %v197_v7 = vsel %vm143_vm0, %v423_v6, -inf  ;;  %v142_v9 = vand.u32 127, %v133_v8  ;;  %124 = vst.msk [vmem:[#allocation2] sm:$0xff] %vm123_vm5, %v384_v38  ;;  %v229_v54 = vld [vmem:[%s460_s2] sm:$0x1] }
   0xf   :  { %125 = vst.msk [vmem:[#allocation2 + $0x8] sm:$0xff] %vm123_vm5, %v384_v38  ;;  %v230_v55 = vld [vmem:[%s461_s3] sm:$0x1]  ;;  %vm126_vm9 = vcmask 0   ;;  %s274_s29 = sshll.u32 %s462_s4, 4  ;;  %s385_s6 = smov [#allocation9]   ;;  %s275_s29 = int_to_ptr.hbm [resolvable:$true] %s274_s29 }
  0x10   :  { %v231_v56 = vsub.f32 %v229_v54, %v230_v55  ;;  %127 = vst.msk [vmem:[#allocation3] sm:$0x1] %vm126_vm9, %v384_v38 }
  0x12   :  { %v232_v57 = vmul.f32 %v231_v56, %v231_v56 }
  0x14   :  { %v234_v60 = vsel %vm233_vm8, %v232_v57, 0.0 }
  0x16   :  { %148 = vmax.xlane.f32.xlu0 %v147_v5  ;;  %198 = vmax.xlane.f32.xlu2 %v197_v7  ;;  %v219_v7 = vld [vmem:[#allocation2 + $0x8] sm:$0xff] }
  0x81   :  { %v146_v10 = vpop.xlane.xlu0 %145  ;;  %v428_v11 = vpop.xlane.xlu2 %195 }
  0x82   :  { %vm150_vm1 = vcmp.eq.f32.partialorder %v130_v0, %v146_v10  ;;  %v200_v12 = vsub.f32 %v417_v1, %v428_v11 }
  0x83   :  { %v152_v13 = vsel %vm150_vm1, %v142_v9, 32 }
  0x84   :  { %v154_v14 = vsel %vm143_vm0, %v152_v13, 2147483647  ;;  %v202_v15 = vmul.f32 1.442695, %v200_v12 }
  0x85   :  { %v156_v16 = vshra.s32 %v154_v14, 16  ;;  %v155_v28 = vand.u32 65535, %v154_v14 }
  0x86   :  { %306 = vpow2.f32 %v202_v15 }
  0x87   :  { %v158_v17 = vcvt.s32.f32 %v156_v16  ;;  %v157_v30 = vcvt.s32.f32 %v155_v28  ;;  %v134_v16 = vshrl.u32 %v133_v8, 7 }
  0x89   :  { %159 = vmin.xlane.f32.xlu1 %v158_v17  ;;  %v149_v18 = vpop.xlane.xlu0 %148  ;;  %v199_v25 = vpop.xlane.xlu2 %198  ;;  %vm240_vm10 = vcmp.lt.s32.totalorder %v134_v16, 1 }
  0x8a   :  { %vm151_vm2 = vcmp.eq.f32.partialorder %v131_v4, %v149_v18  ;;  %v201_v26 = vsub.f32 %v423_v6, %v199_v25  ;;  %v239_v18 = vld [vmem:[#allocation3] sm:$0x1] }
  0x8b   :  { %v153_v19 = vsel %vm151_vm2, %v142_v9, 32 }
  0x8c   :  { %v307_v20 = vpop.eup %306  ;;  %v169_v21 = vsel %vm143_vm0, %v153_v19, 2147483647  ;;  %v204_v27 = vmul.f32 1.442695, %v201_v26 }
  0x8d   :  { %v171_v22 = vshra.s32 %v169_v21, 16  ;;  %v206_v23 = vsel %vm143_vm0, %v307_v20, 0.0  ;;  %v170_v32 = vand.u32 65535, %v169_v21 }
  0x8e   :  { %207 = vadd.xlane.f32.xlu2 %v206_v23  ;;  %308 = vpow2.f32 %v204_v27 }
  0x8f   :  { %v173_v24 = vcvt.s32.f32 %v171_v22  ;;  %v172_v35 = vcvt.s32.f32 %v170_v32 }
  0x91   :  { %174 = vmin.xlane.f32.xlu1 %v173_v24 }
  0x94   :  { %v309_v33 = vpop.eup %308 }
  0x95   :  { %v209_v36 = vsel %vm143_vm0, %v309_v33, 0.0 }
  0xfc   :  { %v160_v29 = vpop.xlane.xlu1 %159 }
  0xfd   :  { %vm161_vm3 = vcmp.eq.f32.partialorder %v158_v17, %v160_v29  ;;  %v166_v39 = vcvt.f32.s32 %v160_v29 }
  0xfe   :  { %v162_v31 = vsel %vm161_vm3, %v157_v30, inf }
  0xff   :  { %163 = vmin.xlane.f32.xlu0 %v162_v31  ;;  %v167_v41 = vshll.u32 %v166_v39, 16 }
 0x101   :  { %v208_v53 = vpop.xlane.xlu2 %207 }
 0x102   :  { %310 = vlog2.f32 %v208_v53 }
 0x104   :  { %v175_v34 = vpop.xlane.xlu1 %174 }
 0x105   :  { %vm176_vm4 = vcmp.eq.f32.partialorder %v173_v24, %v175_v34  ;;  %v181_v44 = vcvt.f32.s32 %v175_v34 }
 0x106   :  { %v177_v37 = vsel %vm176_vm4, %v172_v35, inf }
 0x107   :  { %178 = vmin.xlane.f32.xlu1 %v177_v37  ;;  %210 = vadd.xlane.f32.xlu0 %v209_v36  ;;  %v182_v48 = vshll.u32 %v181_v44, 16 }
 0x108   :  { %v311_v59 = vpop.eup %310 }
 0x109   :  { %v213_v61 = vmul.f32 0.6931472, %v311_v59 }
 0x10b   :  { %v216_v62 = vadd.f32 %v213_v61, %v428_v11 }
 0x172   :  { %v164_v40 = vpop.xlane.xlu0 %163 }
 0x173   :  { %v165_v42 = vcvt.f32.s32 %v164_v40 }
 0x175   :  { %v168_v43 = vadd.s32 %v167_v41, %v165_v42 }
 0x177   :  { %vm184_vm6 = vcmp.eq.s32.totalorder %v142_v9, %v168_v43 }
 0x178   :  { %v186_v45 = vsel %vm184_vm6, %v417_v1, 0.0  ;;  %v218_v1 = vld [vmem:[#allocation2] sm:$0xff] }
 0x179   :  { %v188_v46 = vsel %vm143_vm0, %v186_v45, 0.0 }
 0x17a   :  { %v179_v47 = vpop.xlane.xlu1 %178  ;;  %189 = vadd.xlane.f32.xlu1 %v188_v46  ;;  %v211_v58 = vpop.xlane.xlu0 %210 }
 0x17b   :  { %v180_v49 = vcvt.f32.s32 %v179_v47  ;;  %312 = vlog2.f32 %v211_v58 }
 0x17d   :  { %v183_v50 = vadd.s32 %v182_v48, %v180_v49 }
 0x17f   :  { %vm185_vm7 = vcmp.eq.s32.totalorder %v142_v9, %v183_v50 }
 0x180   :  { %v187_v51 = vsel %vm185_vm7, %v423_v6, 0.0 }
 0x181   :  { %v191_v52 = vsel %vm143_vm0, %v187_v51, 0.0  ;;  %v313_v63 = vpop.eup %312 }
 0x182   :  { %192 = vadd.xlane.f32.xlu2 %v191_v52  ;;  %235 = vadd.xlane.f32.xlu1 %v234_v60  ;;  %v215_v3 = vmul.f32 0.6931472, %v313_v63 }
 0x184   :  { %v217_v5 = vadd.f32 %v215_v3, %v199_v25 }
 0x1ed   :  { %v190_v0 = vpop.xlane.xlu1 %189 }
 0x1ee   :  { %v220_v2 = vsub.f32 %v216_v62, %v190_v0 }
 0x1f0   :  { %v224_v4 = vadd.f32 %v220_v2, %v218_v1 }
 0x1f2   :  { %227 = vst.msk [vmem:[#allocation2] sm:$0xff] %vm123_vm5, %v224_v4 }
 0x1f5   :  { %v193_v6 = vpop.xlane.xlu2 %192  ;;  %v236_v17 = vpop.xlane.xlu1 %235 }
 0x1f6   :  { %v221_v9 = vsub.f32 %v217_v5, %v193_v6  ;;  %v241_v19 = vsel %vm240_vm10, %v236_v17, 0.0 }
 0x1f7   :  { %v242_v20 = vadd.f32 %v241_v19, %v239_v18 }
 0x1f8   :  { %v225_v10 = vadd.f32 %v221_v9, %v219_v7 }
 0x1f9   :  { %v248_v12 = vld [vmem:[#allocation2] sm:$0xff]  ;;  %244 = vst.msk [vmem:[#allocation3] sm:$0x1] %vm126_vm9, %v242_v20 }
 0x1fa   :  { %228 = vst.msk [vmem:[#allocation2 + $0x8] sm:$0xff] %vm123_vm5, %v225_v10  ;;  %v250_v14 = vsel %vm123_vm5, %v248_v12, 0.0 }
 0x200   :  { %v264_v28 = vld [vmem:[#allocation3] sm:$0x1] }
 0x201   :  { %v249_v13 = vld [vmem:[#allocation2 + $0x8] sm:$0xff] }
 0x202   :  { %v251_v11 = vsel %vm123_vm5, %v249_v13, 0.0 }
 0x203   :  { %v252_v15 = vadd.f32 %v251_v11, %v250_v14 }
 0x205   :  { %253 = vadd.xlane.f32.xlu0 %v252_v15 }
 0x278   :  { %v254_v21 = vpop.xlane.xlu0 %253 }
 0x279   :  { %v255_v22 = vrot.slane %v254_v21, 4 }
 0x27b   :  { %v256_v23 = vadd.f32 %v255_v22, %v254_v21 }
 0x27d   :  { %v257_v24 = vrot.slane %v256_v23, 2 }
 0x27f   :  { %v258_v25 = vadd.f32 %v257_v24, %v256_v23 }
 0x281   :  { %v259_v26 = vrot.slane %v258_v25, 1 }
 0x283   :  { %v260_v27 = vadd.f32 %v259_v26, %v258_v25 }
 0x285   :  { %296 = vpush %v260_v27 }
 0x286   :  { %298 = vpush %v264_v28 }
 0x2b6   :  { %s297_s30 = spop %296 }
 0x2b7   :  { %263 = sst [smem:[#allocation9]] %s297_s30  ;;  %s299_s5 = spop %298 }
 0x2b8   :  { %268 = sst [smem:[#allocation9 + $0x1]] %s299_s5 }
 0x2b9   :  { %277 = dma.smem_to_hbm %s385_s6, 16, %s275_s29, [#allocation6]  }
 0x2ba   :  { %378 = dma.done.wait [#allocation6], 16  }
 0x2bb   :  { %379 = vsyncadd [#allocation6], 4294967280 }
 0x2bc   :  { %282 = sfence }
 0x2bd   :  { %283 = vsyncpa [#allocation5], 1 }
 0x2be   :  { %284 = vsyncpa [#allocation8], 1 }
 0x2bf   :  { %285 = vsyncpa [#allocation6], 1 }

</bundles_post_ra>
